<compile_context>
chip_gen: v7x
topology: tpu7x:2x2x1
jax: 0.10.0
libtpu: 0.0.40
codegen_flags: <defaults>
</compile_context>

<pallas_src>
from functools import partial

import jax
import jax.numpy as jnp
import numpy as np
from jax.experimental import pallas as pl
from jax.experimental.pallas import tpu as pltpu

TRAINSTEP = 20                    # sequence length L
CONV_OUT = 64                     # conv1d out channels
CONV_K = 2                        # conv1d kernel size
L_OUT = TRAINSTEP - CONV_K + 1    # 19
FC1_IN = CONV_OUT * L_OUT         # 1216
FC1_PAD = 1280                    # 10 x 128 lanes (whole MXU K tiles), zero-padded
FC1_OUT = 50
FC2_OUT = 1
X_AUG = TRAINSTEP + 1             # 21: input + ones column (conv-bias fold)
DEFAULT_TILE_B = 256              # batch tile (multiple of 8); use 128 on v5e if tuning


def _round_up(n, m):
    return ((n + m - 1) // m) * m


def cnn_kernel(x_ref, m_ref, w1_ref, b1_ref, w2_ref, b2_ref, o_ref):
    # x_ref  : (TB, 21)      VMEM  [input rows | ones column], bf16
    # m_ref  : (21, 1280)    VMEM  Toeplitz conv weight (+bias row 20), cols in c*19+t order
    # w1_ref : (1280, 50)    VMEM  fc1 weight, rows in c*19+t order, zero rows [1216:1280)
    # b1_ref : (1, 50)       VMEM  fc1 bias row, f32
    # w2_ref : (50, 1)       VMEM  fc2 weight
    # b2_ref : (1, 1)        SMEM  fc2 bias scalar, f32
    # o_ref  : (TB, 1)       VMEM  output, f32
    # Conv1d(1->64,k=2) + bias + implicit flatten: one MXU matmul (bias rides the ones col).
    h1 = jnp.maximum(
        jnp.dot(x_ref[...], m_ref[...], preferred_element_type=jnp.float32), 0.0)
    h1 = h1.astype(w1_ref.dtype)                                   # (TB, 1280)
    # fc1 on the MXU, f32 accumulation, bias + ReLU epilogue.
    s1 = jnp.dot(h1, w1_ref[...], preferred_element_type=jnp.float32) + b1_ref[...]
    h2 = jnp.maximum(s1, 0.0).astype(w2_ref.dtype)                 # (TB, 50)
    # fc2 on the MXU, scalar bias from SMEM.
    o_ref[...] = (jnp.dot(h2, w2_ref[...], preferred_element_type=jnp.float32)
                  + b2_ref[0, 0])                                  # (TB, 1)


def prepare_params(params, compute_dtype=jnp.bfloat16):
    """One-time, param-load-time precompute (numpy). NOT on the per-call path."""
    wc, bc, w1, b1, w2, b2 = [np.asarray(p, dtype=np.float32) for p in params]
    wc2 = wc.reshape(CONV_OUT, CONV_K)                               # (64, 2)

    # Toeplitz/im2col conv matrix with the conv bias as an extra (ones-column) row.
    # m[i, c*19 + t] = wc2[c, tap] where i = t + tap;  m[20, c*19 + t] = bc[c].
    m = np.zeros((X_AUG, FC1_PAD), np.float32)
    cols = np.arange(CONV_OUT)[:, None] * L_OUT + np.arange(L_OUT)[None, :]   # (64, 19)
    rows = np.arange(L_OUT)[None, :]                                          # (1, 19)
    for tap in range(CONV_K):
        m[rows + tap, cols] = wc2[:, tap][:, None]
    m[TRAINSTEP, :FC1_IN] = np.repeat(bc, L_OUT)     # bias row, c*19+t order; pad lanes stay 0

    # fc1 weight transposed to (1216, 50), zero-padded to (1280, 50).
    w1p = np.zeros((FC1_PAD, FC1_OUT), np.float32)
    w1p[:FC1_IN, :] = w1.T

    return (
        jnp.asarray(m, compute_dtype),                               # (21, 1280)
        jnp.asarray(w1p, compute_dtype),                             # (1280, 50)
        jnp.asarray(b1.reshape(1, FC1_OUT), jnp.float32),            # (1, 50)
        jnp.asarray(w2.reshape(FC2_OUT, FC1_OUT).T, compute_dtype),  # (50, 1)
        jnp.asarray(b2.reshape(1, 1), jnp.float32),                  # (1, 1) -> SMEM
    )


@partial(jax.jit, static_argnames=("tile_b",))
def _forward_impl(x2d, prep, tile_b):
    m, w1p, b1r, w2t, b2s = prep
    B = x2d.shape[0]
    # Append the ones column that picks up the conv bias row of M.
    x_aug = jnp.concatenate(
        [x2d.astype(m.dtype), jnp.ones((B, 1), m.dtype)], axis=1)    # (B, 21)
    Bp = _round_up(B, tile_b)
    if Bp != B:
        x_aug = jnp.pad(x_aug, ((0, Bp - B), (0, 0)))

    out = pl.pallas_call(
        cnn_kernel,
        out_shape=jax.ShapeDtypeStruct((Bp, FC2_OUT), jnp.float32),
        grid=(Bp // tile_b,),
        in_specs=[
            pl.BlockSpec((tile_b, X_AUG), lambda i: (i, 0)),         # x: tiled on batch
            pl.BlockSpec((X_AUG, FC1_PAD), lambda i: (0, 0)),        # weights: constant
            pl.BlockSpec((FC1_PAD, FC1_OUT), lambda i: (0, 0)),      #   index_map => DMA'd
            pl.BlockSpec((1, FC1_OUT), lambda i: (0, 0)),            #   once, VMEM-resident
            pl.BlockSpec((FC1_OUT, FC2_OUT), lambda i: (0, 0)),
            pl.BlockSpec(memory_space=pltpu.MemorySpace.SMEM),       # fc2 bias scalar
        ],
        out_specs=pl.BlockSpec((tile_b, FC2_OUT), lambda i: (i, 0)),
        compiler_params=pltpu.CompilerParams(
            dimension_semantics=("parallel",)),                      # v7x: 2 TCs split batch
    )(x_aug, m, w1p, b1r, w2t, b2s)
    return out[:B]


def cnn_forward(x_ncl, prep, tile_b=None):
    """x_ncl: (B, 1, 20) float32 (PyTorch NCL input). B=1 matches the module as written."""
    B = x_ncl.shape[0]
    x2d = x_ncl.reshape(B, TRAINSTEP).astype(jnp.float32)
    if tile_b is None:
        tile_b = max(8, min(DEFAULT_TILE_B, _round_up(B, 8)))
    out = _forward_impl(x2d, prep, tile_b=tile_b)
    if B == 1:
        return out.reshape(1)    # PyTorch returns shape (1,) for the 1-D fc input
    return out


# ---------------------------- references for validation ----------------------------

def reference_forward_single(x_row, params):
    """Pure-JAX, f32, Precision.HIGHEST — exact PyTorch semantics for one sample (x: (20,))."""
    wc, bc, w1, b1, w2, b2 = params
    wc2 = wc.reshape(CONV_OUT, CONV_K)
    conv = (wc2[:, 0:1] * x_row[None, 0:L_OUT]
            + wc2[:, 1:2] * x_row[None, 1:L_OUT + 1] + bc[:, None])            # (64, 19)
    h1 = jnp.maximum(conv, 0.0).reshape(-1)                                    # (1216,)
    h2 = jnp.maximum(
        jnp.dot(w1, h1, precision=jax.lax.Precision.HIGHEST) + b1, 0.0)        # (50,)
    return jnp.dot(w2, h2, precision=jax.lax.Precision.HIGHEST) + b2           # (1,)


def reference_forward_batched(x2d, params):
    return jax.vmap(lambda r: reference_forward_single(r, params))(x2d)        # (B, 1)


def same_math_reference(x2d, prep):
    """Identical arithmetic (bf16 operands, f32 accum) in plain JAX — tight structural check."""
    m, w1p, b1r, w2t, b2s = prep
    B = x2d.shape[0]
    x_aug = jnp.concatenate([x2d.astype(m.dtype), jnp.ones((B, 1), m.dtype)], axis=1)
    h1 = jnp.maximum(jnp.dot(x_aug, m, preferred_element_type=jnp.float32), 0.0)
    h1 = h1.astype(w1p.dtype)
    s1 = jnp.dot(h1, w1p, preferred_element_type=jnp.float32) + b1r
    h2 = jnp.maximum(s1, 0.0).astype(w2t.dtype)
    return jnp.dot(h2, w2t, preferred_element_type=jnp.float32) + b2s[0, 0]


def init_params(key):
    k = jax.random.split(key, 6)
    wc = 0.1 * jax.random.normal(k[0], (CONV_OUT, 1, CONV_K), jnp.float32)
    bc = 0.1 * jax.random.normal(k[1], (CONV_OUT,), jnp.float32)
    w1 = 0.05 * jax.random.normal(k[2], (FC1_OUT, FC1_IN), jnp.float32)
    b1 = 0.05 * jax.random.normal(k[3], (FC1_OUT,), jnp.float32)
    w2 = 0.05 * jax.random.normal(k[4], (FC2_OUT, FC1_OUT), jnp.float32)
    b2 = 0.05 * jax.random.normal(k[5], (FC2_OUT,), jnp.float32)
    return (wc, bc, w1, b1, w2, b2)


if __name__ == "__main__":
    key = jax.random.PRNGKey(0)
    k_x1, k_xb, k_p = jax.random.split(key, 3)
    params = init_params(k_p)
    prep = prepare_params(params)     # one-time precompute, hoisted off the per-call path

    # (a) Module-as-written path: batch = 1, output shape (1,).
    x1 = jax.random.normal(k_x1, (1, 1, TRAINSTEP), jnp.float32)
    out1 = jax.block_until_ready(cnn_forward(x1, prep))
    ref1 = reference_forward_single(x1.reshape(TRAINSTEP), params)
    # bf16 MXU operands vs f32 Precision.HIGHEST reference -> bf16-appropriate tolerance.
    if not np.allclose(np.asarray(out1), np.asarray(ref1), rtol=5e-2, atol=5e-3):
        raise AssertionError(f"B=1 mismatch: pallas={out1} ref={ref1}")

    # (b) Batched throughput path: 16 independent rows, tile_b=8 -> 2 grid steps,
    #     weights VMEM-resident across steps.
    xb = jax.random.normal(k_xb, (16, 1, TRAINSTEP), jnp.float32)
    outb = jax.block_until_ready(cnn_forward(xb, prep, tile_b=8))
    refb = reference_forward_batched(xb.reshape(16, TRAINSTEP), params)
    if not np.allclose(np.asarray(outb), np.asarray(refb), rtol=5e-2, atol=5e-3):
        raise AssertionError("batched mismatch vs f32 reference")
    # Tight check vs identical-math JAX (catches Toeplitz/padding/layout bugs exactly).
    smb = same_math_reference(xb.reshape(16, TRAINSTEP).astype(jnp.float32), prep)
    if not np.allclose(np.asarray(outb), np.asarray(smb), rtol=1e-4, atol=1e-5):
        raise AssertionError("batched mismatch vs same-math reference")

    print("KERNEL_OK")
</pallas_src>

<mosaic_0001>
module attributes {stable_mosaic.version = 11 : i64} {
  func.func @cnn_kernel(%arg0: i32, %arg1: memref<8x21xbf16, #tpu.memory_space<vmem>>, %arg2: memref<21x1280xbf16, #tpu.memory_space<vmem>>, %arg3: memref<1280x50xbf16, #tpu.memory_space<vmem>>, %arg4: memref<1x50xf32, #tpu.memory_space<vmem>>, %arg5: memref<50x1xbf16, #tpu.memory_space<vmem>>, %arg6: memref<1x1xf32, #tpu.memory_space<smem>>, %arg7: memref<8x1xf32, #tpu.memory_space<vmem>>) attributes {dimension_semantics = [#tpu.dimension_semantics<parallel>], iteration_bounds = array<i64: 1>, scalar_prefetch = 0 : i64, scratch_operands = 0 : i64, tpu.core_type = #tpu.core_type<tc>, window_params = [{transform_indices = @transform_0, window_bounds = array<i64: 8, 21>}, {pipeline_mode = #tpu.pipeline_mode<synchronous>, transform_indices = @transform_1, window_bounds = array<i64: 21, 1280>}, {pipeline_mode = #tpu.pipeline_mode<synchronous>, transform_indices = @transform_2, window_bounds = array<i64: 1280, 50>}, {pipeline_mode = #tpu.pipeline_mode<synchronous>, transform_indices = @transform_3, window_bounds = array<i64: 1, 50>}, {pipeline_mode = #tpu.pipeline_mode<synchronous>, transform_indices = @transform_4, window_bounds = array<i64: 50, 1>}, {transform_indices = @transform_5, window_bounds = array<i64: 1, 1>}, {transform_indices = @transform_6, window_bounds = array<i64: 8, 1>}]} {
    %c0 = arith.constant 0 : index
    %c0_0 = arith.constant 0 : index
    %0 = vector.load %arg1[%c0, %c0_0] : memref<8x21xbf16, #tpu.memory_space<vmem>>, vector<8x21xbf16>
    %c0_1 = arith.constant 0 : index
    %c0_2 = arith.constant 0 : index
    %1 = vector.load %arg2[%c0_1, %c0_2] : memref<21x1280xbf16, #tpu.memory_space<vmem>>, vector<21x1280xbf16>
    %cst = arith.constant dense<0.000000e+00> : vector<8x1280xf32>
    %2 = tpu.matmul %0, %1, %cst {dimension_numbers = #tpu.dot_dimension_numbers<[1], [0], [0], [1], [0, 0, 1, 1], [], []>} : vector<8x21xbf16>, vector<21x1280xbf16>, vector<8x1280xf32> -> vector<8x1280xf32>
    %cst_3 = arith.constant 0.000000e+00 : f32
    %3 = vector.broadcast %cst_3 : f32 to vector<8x1280xf32>
    %4 = arith.maximumf %2, %3 : vector<8x1280xf32>
    %5 = arith.truncf %4 : vector<8x1280xf32> to vector<8x1280xbf16>
    %c0_4 = arith.constant 0 : index
    %c0_5 = arith.constant 0 : index
    %6 = vector.load %arg3[%c0_4, %c0_5] : memref<1280x50xbf16, #tpu.memory_space<vmem>>, vector<1280x50xbf16>
    %cst_6 = arith.constant dense<0.000000e+00> : vector<8x50xf32>
    %7 = tpu.matmul %5, %6, %cst_6 {dimension_numbers = #tpu.dot_dimension_numbers<[1], [0], [0], [1], [0, 0, 1, 1], [], []>} : vector<8x1280xbf16>, vector<1280x50xbf16>, vector<8x50xf32> -> vector<8x50xf32>
    %c0_7 = arith.constant 0 : index
    %c0_8 = arith.constant 0 : index
    %8 = vector.load %arg4[%c0_7, %c0_8] : memref<1x50xf32, #tpu.memory_space<vmem>>, vector<1x50xf32>
    %9 = vector.broadcast %8 : vector<1x50xf32> to vector<8x50xf32>
    %10 = arith.addf %7, %9 : vector<8x50xf32>
    %cst_9 = arith.constant 0.000000e+00 : f32
    %11 = vector.broadcast %cst_9 : f32 to vector<8x50xf32>
    %12 = arith.maximumf %10, %11 : vector<8x50xf32>
    %13 = arith.truncf %12 : vector<8x50xf32> to vector<8x50xbf16>
    %c0_10 = arith.constant 0 : index
    %c0_11 = arith.constant 0 : index
    %14 = vector.load %arg5[%c0_10, %c0_11] : memref<50x1xbf16, #tpu.memory_space<vmem>>, vector<50x1xbf16>
    %cst_12 = arith.constant dense<0.000000e+00> : vector<8x1xf32>
    %15 = tpu.matmul %13, %14, %cst_12 {dimension_numbers = #tpu.dot_dimension_numbers<[1], [0], [0], [1], [0, 0, 1, 1], [], []>} : vector<8x50xbf16>, vector<50x1xbf16>, vector<8x1xf32> -> vector<8x1xf32>
    %c0_13 = arith.constant 0 : index
    %c0_14 = arith.constant 0 : index
    %16 = memref.load %arg6[%c0_13, %c0_14] : memref<1x1xf32, #tpu.memory_space<smem>>
    %17 = vector.broadcast %16 : f32 to vector<8x1xf32>
    %18 = arith.addf %15, %17 : vector<8x1xf32>
    %c0_15 = arith.constant 0 : index
    %c0_16 = arith.constant 0 : index
    %19 = vector.load %arg7[%c0_15, %c0_16] : memref<8x1xf32, #tpu.memory_space<vmem>>, vector<8x1xf32>
    tpu.vector_store %arg7[%c0_15, %c0_16], %18 {strides = array<i32>} : memref<8x1xf32, #tpu.memory_space<vmem>>, vector<8x1xf32>,
    return
  }
  func.func @transform_0(%arg0: i32) -> (i32, i32) {
    %c0_i32 = arith.constant 0 : i32
    %c0_i32_0 = arith.constant 0 : i32
    return %arg0, %c0_i32 : i32, i32
  }
  func.func @transform_1(%arg0: i32) -> (i32, i32) {
    %c0_i32 = arith.constant 0 : i32
    %c0_i32_0 = arith.constant 0 : i32
    %c0_i32_1 = arith.constant 0 : i32
    return %c0_i32, %c0_i32_0 : i32, i32
  }
  func.func @transform_2(%arg0: i32) -> (i32, i32) {
    %c0_i32 = arith.constant 0 : i32
    %c0_i32_0 = arith.constant 0 : i32
    %c0_i32_1 = arith.constant 0 : i32
    return %c0_i32, %c0_i32_0 : i32, i32
  }
  func.func @transform_3(%arg0: i32) -> (i32, i32) {
    %c0_i32 = arith.constant 0 : i32
    %c0_i32_0 = arith.constant 0 : i32
    %c0_i32_1 = arith.constant 0 : i32
    return %c0_i32, %c0_i32_0 : i32, i32
  }
  func.func @transform_4(%arg0: i32) -> (i32, i32) {
    %c0_i32 = arith.constant 0 : i32
    %c0_i32_0 = arith.constant 0 : i32
    %c0_i32_1 = arith.constant 0 : i32
    return %c0_i32, %c0_i32_0 : i32, i32
  }
  func.func @transform_5(%arg0: i32) -> (i32, i32) {
    %c0_i32 = arith.constant 0 : i32
    %c0_i32_0 = arith.constant 0 : i32
    %c0_i32_1 = arith.constant 0 : i32
    return %c0_i32, %c0_i32_0 : i32, i32
  }
  func.func @transform_6(%arg0: i32) -> (i32, i32) {
    %c0_i32 = arith.constant 0 : i32
    %c0_i32_0 = arith.constant 0 : i32
    return %arg0, %c0_i32 : i32, i32
  }
}

</mosaic_0001>

<bundles_post_ra>
// kernel: _forward_impl.1
= control target key start
LH: loop header
LB: loop body
LE: loop exit
PB: predicated region body
PF: predicated region fallthrough
CT: control target
= control target key end

     0   :  { %vm120_vm0 = vcmask 1041408   ;;  %vm121_vm1 = vcmask 1042432   ;;  %v1663_v1 = vmov 65535   ;;  %v1664_v3 = vmov 0   ;;  %s2042_s1 = inlined_call_operand.vmem [shape: bf16[21,1280], index: 1, kind: input, shape index: {}]   ;;  %s2043_s0 = inlined_call_operand.vmem [shape: bf16[8,21], index: 0, kind: input, shape index: {}]   ;;  %s2044_s2 = inlined_call_operand.vmem [shape: bf16[1280,50], index: 2, kind: input, shape index: {}]   ;;  %s2045_s4 = inlined_call_operand.vmem [shape: bf16[50,1], index: 4, kind: input, shape index: {}]   ;;  %s2046_s3 = inlined_call_operand.vmem [shape: f32[1,50], index: 3, kind: input, shape index: {}]   ;;  %s2047_s5 = inlined_call_operand.<no memory space> [shape: f32[1,1], index: 5, kind: input, shape index: {}]   ;;  %s2048_s6 = inlined_call_operand.vmem [shape: f32[8,1], index: 6, kind: output, shape index: {}]  }
   0x1   :  { %v1554_v0 = vld [vmem:[%s2042_s1 + $0x4] ss:$40 sps:$4 sm:$0xff]   ;;  %v122_v2 = vsel %vm120_vm0, 4294967295, %v1663_v1  ;;  %186 = vmatprep.mubr.bf16.mxu0 %v1664_v3  ;;  %227 = vmatprep.mubr.bf16.mxu1 %v1664_v3  ;;  %v1556_v4 = vld [vmem:[%s2042_s1] ss:$40 sps:$4 sm:$0xff]   ;;  %vm116_vm2 = vcmask 171008  }
   0x2   :  { %v1710_v5 = vsel %vm121_vm1, %v122_v2, 0  ;;  %154 = vmatprep.subr.bf16.mxu0 %v1554_v0  ;;  %v1557_v6 = vld [vmem:[%s2042_s1 + $0xc] ss:$40 sps:$4 sm:$0xff]   ;;  %v1559_v7 = vld [vmem:[%s2042_s1 + $0x8] ss:$40 sps:$4 sm:$0xff]   ;;  %v1579_v36 = vld [vmem:[%s2044_s2 + $0x40] sm:$0xff]  }
   0x3   :  { %v36_v8 = vld [vmem:[%s2042_s1 + $0x50] sm:$0x77]  ;;  %155 = vmatpush1.bf16.msra.mxu0 %v1556_v4  ;;  %v37_v11 = vld [vmem:[%s2042_s1 + $0x58] sm:$0x77]  ;;  %195 = vmatprep.subr.bf16.mxu1 %v1557_v6  ;;  %v38_v17 = vld [vmem:[%s2042_s1 + $0x60] sm:$0x77] }
   0x4   :  { %v1323_v9 = vcombine.high %v36_v8, %v36_v8  ;;  %v1322_v10 = vcombine.low %v36_v8, %v36_v8  ;;  %v1325_v12 = vcombine.high %v37_v11, %v37_v11  ;;  %v1324_v13 = vcombine.low %v37_v11, %v37_v11  ;;  %v1566_v14 = vld [vmem:[%s2042_s1 + $0x14] ss:$40 sps:$4 sm:$0xff]   ;;  %196 = vmatpush1.bf16.msra.mxu1 %v1559_v7  ;;  %v39_v22 = vld [vmem:[%s2042_s1 + $0x68] sm:$0x77]  ;;  %v25_v24 = vld [vmem:[%s2043_s0] sm:$0xf] }
   0x5   :  { %v1327_v20 = vcombine.high %v38_v17, %v38_v17  ;;  %v1571_v21 = vld [vmem:[%s2042_s1 + $0x1c] ss:$40 sps:$4 sm:$0xff]   ;;  %v1329_v23 = vcombine.high %v39_v22, %v39_v22  ;;  %v1564_v25 = vld [vmem:[%s2042_s1 + $0x10] ss:$40 sps:$4 sm:$0xff]   ;;  %v1326_v26 = vcombine.low %v38_v17, %v38_v17  ;;  %v1328_v29 = vcombine.low %v39_v22, %v39_v22  ;;  %v1574_v37 = vld [vmem:[%s2042_s1 + $0x20] ss:$40 sps:$4 sm:$0xff]  }
   0x6   :  { %v128_v15 = vand.u32 %v1323_v9, %v1710_v5  ;;  %v125_v16 = vand.u32 %v1322_v10, %v1710_v5  ;;  %v134_v18 = vand.u32 %v1325_v12, %v1710_v5  ;;  %v131_v19 = vand.u32 %v1324_v13, %v1710_v5  ;;  %v1569_v28 = vld [vmem:[%s2042_s1 + $0x18] ss:$40 sps:$4 sm:$0xff]   ;;  %v40_v31 = vld [vmem:[%s2042_s1 + $0x70] sm:$0x77]  ;;  %v1576_v34 = vld [vmem:[%s2042_s1 + $0x24] ss:$40 sps:$4 sm:$0xff]  }
   0x7   :  { %v140_v27 = vand.u32 %v1327_v20, %v1710_v5  ;;  %v146_v30 = vand.u32 %v1329_v23, %v1710_v5  ;;  %v137_v32 = vand.u32 %v1326_v26, %v1710_v5  ;;  %v143_v33 = vand.u32 %v1328_v29, %v1710_v5  ;;  %v1580_v40 = vld [vmem:[%s2044_s2] sm:$0xff]   ;;  %v1583_v41 = vld [vmem:[%s2044_s2 + $0x48] sm:$0xff]   ;;  %v1587_v45 = vld [vmem:[%s2044_s2 + $0x50] sm:$0xff]  }
   0x8   :  { %156 = vmatprep.subr.bf16.mxu0 %v128_v15  ;;  %197 = vmatprep.subr.bf16.mxu1 %v134_v18  ;;  %v1331_v35 = vcombine.high %v40_v31, %v40_v31  ;;  %v1330_v38 = vcombine.low %v40_v31, %v40_v31  ;;  %v1581_v43 = vld [vmem:[%s2044_s2 + $0xc0] sm:$0xff]   ;;  %v1584_v44 = vld [vmem:[%s2044_s2 + $0x8] sm:$0xff]   ;;  %v1588_v48 = vld [vmem:[%s2044_s2 + $0x10] sm:$0xff]   ;;  %vm1262_vm3 = vcmask 1040384   ;;  %vm1666_vm4 = vmmov 0  }
   0x9   :  { %157 = vmatpush1.bf16.msra.mxu0 %v125_v16  ;;  %198 = vmatpush1.bf16.msra.mxu1 %v131_v19  ;;  %v1582_v46 = vld [vmem:[%s2044_s2 + $0x80] sm:$0xff]   ;;  %v1585_v47 = vld [vmem:[%s2044_s2 + $0xc8] sm:$0xff]   ;;  %v1591_v49 = vld [vmem:[%s2044_s2 + $0x58] sm:$0xff]   ;;  %vm1258_vm5 = vcmask 408576   ;;  %vm1306_vm6 = vcmask 7168  }
   0xa   :  { %236 = vmatprep.subr.bf16.mxu0 %v1566_v14  ;;  %277 = vmatprep.subr.bf16.mxu1 %v1571_v21  ;;  %v152_v39 = vand.u32 %v1331_v35, %v1710_v5  ;;  %v149_v42 = vand.u32 %v1330_v38, %v1710_v5  ;;  %v1586_v50 = vld [vmem:[%s2044_s2 + $0x88] sm:$0xff]   ;;  %v1589_v51 = vld [vmem:[%s2044_s2 + $0xd0] sm:$0xff]   ;;  %v1592_v53 = vld [vmem:[%s2044_s2 + $0x18] sm:$0xff]  }
   0xb   :  { %v1590_v52 = vld [vmem:[%s2044_s2 + $0x90] sm:$0xff]   ;;  %v1595_v54 = vld [vmem:[%s2044_s2 + $0x60] sm:$0xff]   ;;  %v1593_v55 = vld [vmem:[%s2044_s2 + $0xd8] sm:$0xff]  }
   0xc   :  { %1332 = vmatmul.mubr.msk.bf16.vlgmr.msra.gmra.mrb[0].mxu0 %vm116_vm2, %v25_v24  ;;  %1333 = vmatmul.mubr.msk.bf16.vlgmr.msra.gmra.mrb[0].mxu1 %vm116_vm2, %v25_v24  ;;  %v1596_v56 = vld [vmem:[%s2044_s2 + $0x20] sm:$0xff]   ;;  %v1594_v57 = vld [vmem:[%s2044_s2 + $0x98] sm:$0xff]   ;;  %v1599_v58 = vld [vmem:[%s2044_s2 + $0x68] sm:$0xff]  }
   0xd   :  { %237 = vmatpush1.bf16.msra.mxu0 %v1564_v25  ;;  %278 = vmatpush1.bf16.msra.mxu1 %v1569_v28  ;;  %v1597_v59 = vld [vmem:[%s2044_s2 + $0xe0] sm:$0xff]   ;;  %v1600_v60 = vld [vmem:[%s2044_s2 + $0x28] sm:$0xff]   ;;  %v1603_v61 = vld [vmem:[%s2044_s2 + $0x70] sm:$0xff]  }
   0xe   :  { %238 = vmatprep.subr.bf16.mxu0 %v140_v27  ;;  %268 = vmatprep.mubr.bf16.mxu0 %v1664_v3  ;;  %v1598_v62 = vld [vmem:[%s2044_s2 + $0xa0] sm:$0xff]   ;;  %v1601_v63 = vld [vmem:[%s2044_s2 + $0xe8] sm:$0xff]   ;;  %v1604_v0 = vld [vmem:[%s2044_s2 + $0x30] sm:$0xff]  }
   0xf   :  { %279 = vmatprep.subr.bf16.mxu1 %v146_v30  ;;  %309 = vmatprep.mubr.bf16.mxu1 %v1664_v3  ;;  %v1602_v1 = vld [vmem:[%s2044_s2 + $0xa8] sm:$0xff]   ;;  %v1605_v2 = vld [vmem:[%s2044_s2 + $0xf0] sm:$0xff]   ;;  %v1607_v4 = vld [vmem:[%s2044_s2 + $0x78] sm:$0xff]  }
  0x10   :  { %v1608_v5 = vld [vmem:[%s2044_s2 + $0x38] sm:$0xff]   ;;  %v1611_v8 = vld [vmem:[%s2044_s2 + $0x140] sm:$0xff]   ;;  %v1615_v28 = vld [vmem:[%s2044_s2 + $0x148] sm:$0xff]  }
  0x11   :  { %239 = vmatpush1.bf16.msra.mxu0 %v137_v32  ;;  %280 = vmatpush1.bf16.msra.mxu1 %v143_v33  ;;  %v1609_v6 = vld [vmem:[%s2044_s2 + $0xf8] sm:$0xff]   ;;  %v1613_v9 = vld [vmem:[%s2044_s2 + $0x1c0] sm:$0xff]   ;;  %v1617_v29 = vld [vmem:[%s2044_s2 + $0x1c8] sm:$0xff]  }
  0x12   :  { %318 = vmatprep.subr.bf16.mxu0 %v1576_v34  ;;  %1423 = vmatprep.subr.bf16.mxu1 %v1579_v36  ;;  %v1610_v7 = vld [vmem:[%s2044_s2 + $0xb8] sm:$0xff]   ;;  %v1612_v23 = vld [vmem:[%s2044_s2 + $0x100] sm:$0xff]   ;;  %v1616_v30 = vld [vmem:[%s2044_s2 + $0x108] sm:$0xff]  }
  0x13   :  { %v1614_v27 = vld [vmem:[%s2044_s2 + $0x180] sm:$0xff]   ;;  %v1618_v32 = vld [vmem:[%s2044_s2 + $0x188] sm:$0xff]   ;;  %v1619_v33 = vld [vmem:[%s2044_s2 + $0x150] sm:$0xff]  }
  0x14   :  { %1334 = vmatmul.mubr.msk.bf16.vlgmr.msra.gmra.mrb[4].mxu0 %vm116_vm2, %v25_v24  ;;  %1335 = vmatmul.mubr.msk.bf16.vlgmr.msra.gmra.mrb[4].mxu1 %vm116_vm2, %v25_v24  ;;  %v1621_v36 = vld [vmem:[%s2044_s2 + $0x1d0] sm:$0xff]  }
  0x15   :  { %319 = vmatpush1.bf16.msra.mxu0 %v1574_v37  ;;  %350 = vmatprep.mubr.bf16.mxu0 %v1664_v3  ;;  %v1606_v3 = vld [vmem:[%s2044_s2 + $0xb0] sm:$0xff]  }
  0x16   :  { %320 = vmatprep.subr.bf16.mxu0 %v152_v39  ;;  %1424 = vmatpush3.bf16.msra.mxu1 %v1580_v40 }
  0x17   :  { %1425 = vmatprep.subr.bf16.mxu1 %v1583_v41 }
  0x19   :  { %321 = vmatpush1.bf16.msra.mxu0 %v149_v42 }
  0x1a   :  { %1445 = vmatprep.subr.bf16.mxu0 %v1581_v43  ;;  %1426 = vmatpush3.bf16.msra.mxu1 %v1584_v44  ;;  %v1620_v43 = vld [vmem:[%s2044_s2 + $0x110] sm:$0xff]  }
  0x1b   :  { %1427 = vmatprep.subr.bf16.mxu1 %v1587_v45 }
  0x1c   :  { %1336 = vmatmul.mubr.msk.bf16.vlgmr.msra.gmra.mrb[8].mxu0 %vm116_vm2, %v25_v24 }
  0x1d   :  { %1446 = vmatpush3.bf16.msra.mxu0 %v1582_v46  ;;  %v1622_v46 = vld [vmem:[%s2044_s2 + $0x190] sm:$0xff]  }
  0x1e   :  { %1447 = vmatprep.subr.bf16.mxu0 %v1585_v47  ;;  %1428 = vmatpush3.bf16.msra.mxu1 %v1588_v48  ;;  %v1623_v47 = vld [vmem:[%s2044_s2 + $0x158] sm:$0xff]  }
  0x1f   :  { %1429 = vmatprep.subr.bf16.mxu1 %v1591_v49  ;;  %v1625_v49 = vld [vmem:[%s2044_s2 + $0x1d8] sm:$0xff]  }
  0x21   :  { %1448 = vmatpush3.bf16.msra.mxu0 %v1586_v50  ;;  %v1624_v50 = vld [vmem:[%s2044_s2 + $0x118] sm:$0xff]  }
  0x22   :  { %1449 = vmatprep.subr.bf16.mxu0 %v1589_v51  ;;  %1430 = vmatpush3.bf16.msra.mxu1 %v1592_v53  ;;  %v1627_v53 = vld [vmem:[%s2044_s2 + $0x160] sm:$0xff]  }
  0x23   :  { %1431 = vmatprep.subr.bf16.mxu1 %v1595_v54 }
  0x25   :  { %1450 = vmatpush3.bf16.msra.mxu0 %v1590_v52  ;;  %v1626_v52 = vld [vmem:[%s2044_s2 + $0x198] sm:$0xff]  }
  0x26   :  { %1451 = vmatprep.subr.bf16.mxu0 %v1593_v55  ;;  %1432 = vmatpush3.bf16.msra.mxu1 %v1596_v56  ;;  %v1629_v55 = vld [vmem:[%s2044_s2 + $0x1e0] sm:$0xff]  }
  0x27   :  { %1433 = vmatprep.subr.bf16.mxu1 %v1599_v58  ;;  %v1628_v58 = vld [vmem:[%s2044_s2 + $0x120] sm:$0xff]  }
  0x29   :  { %1452 = vmatpush3.bf16.msra.mxu0 %v1594_v57 }
  0x2a   :  { %1453 = vmatprep.subr.bf16.mxu0 %v1597_v59  ;;  %1434 = vmatpush3.bf16.msra.mxu1 %v1600_v60  ;;  %v1630_v59 = vld [vmem:[%s2044_s2 + $0x1a0] sm:$0xff]   ;;  %v1631_v60 = vld [vmem:[%s2044_s2 + $0x168] sm:$0xff]  }
  0x2b   :  { %1435 = vmatprep.subr.bf16.mxu1 %v1603_v61  ;;  %v1633_v61 = vld [vmem:[%s2044_s2 + $0x1e8] sm:$0xff]  }
  0x2d   :  { %1454 = vmatpush3.bf16.msra.mxu0 %v1598_v62  ;;  %v1632_v62 = vld [vmem:[%s2044_s2 + $0x128] sm:$0xff]  }
  0x2e   :  { %1455 = vmatprep.subr.bf16.mxu0 %v1601_v63  ;;  %1436 = vmatpush3.bf16.msra.mxu1 %v1604_v0  ;;  %v1634_v63 = vld [vmem:[%s2044_s2 + $0x1a8] sm:$0xff]   ;;  %v1635_v0 = vld [vmem:[%s2044_s2 + $0x170] sm:$0xff]  }
  0x2f   :  { %1437 = vmatprep.subr.bf16.mxu1 %v1607_v4  ;;  %v1639_v4 = vld [vmem:[%s2044_s2 + $0x178] sm:$0xff]  }
  0x31   :  { %1456 = vmatpush3.bf16.msra.mxu0 %v1602_v1  ;;  %v1637_v1 = vld [vmem:[%s2044_s2 + $0x1f0] sm:$0xff]  }
  0x32   :  { %1457 = vmatprep.subr.bf16.mxu0 %v1605_v2  ;;  %1438 = vmatpush3.bf16.msra.mxu1 %v1608_v5  ;;  %v1636_v2 = vld [vmem:[%s2044_s2 + $0x130] sm:$0xff]   ;;  %v1641_v5 = vld [vmem:[%s2044_s2 + $0x1f8] sm:$0xff]  }
  0x33   :  { %1467 = vmatprep.subr.bf16.mxu1 %v1611_v8  ;;  %v1640_v8 = vld [vmem:[%s2044_s2 + $0x138] sm:$0xff]  }
  0x35   :  { %1458 = vmatpush3.bf16.msra.mxu0 %v1606_v3  ;;  %v1638_v3 = vld [vmem:[%s2044_s2 + $0x1b0] sm:$0xff]  }
  0x36   :  { %1459 = vmatprep.subr.bf16.mxu0 %v1609_v6 }
  0x39   :  { %1460 = vmatpush3.bf16.msra.mxu0 %v1610_v7 }
  0x3a   :  { %1489 = vmatprep.subr.bf16.mxu0 %v1613_v9  ;;  %v1642_v9 = vld [vmem:[%s2044_s2 + $0x1b8] sm:$0xff]  }
  0xdf   :  { %v188_v10 = vpop.f32.mrb[0].mxu0  ;;  %v229_v13 = vpop.f32.mrb[0].mxu1 }
  0xe0   :  { %v359_v11 = vmax.f32 %v188_v10, 0.0  ;;  %v190_v12 = vpop.f32.mrb[1].mxu0  ;;  %v361_v16 = vmax.f32 %v229_v13, 0.0  ;;  %v231_v17 = vpop.f32.mrb[1].mxu1  ;;  %v1643_v10 = vld [vmem:[%s2044_s2 + $0x240] sm:$0xff]  }
  0xe1   :  { %v360_v14 = vmax.f32 %v190_v12, 0.0  ;;  %v192_v15 = vpop.f32.mrb[2].mxu0  ;;  %v362_v19 = vmax.f32 %v231_v17, 0.0  ;;  %v233_v20 = vpop.f32.mrb[2].mxu1  ;;  %v1646_v17 = vld [vmem:[%s2044_s2 + $0x208] sm:$0xff]  }
  0xe2   :  { %v193_v18 = vpop.f32.mrb[3].mxu0  ;;  %v371_v22 = vpack.c.bf16 %v361_v16, %v361_v16  ;;  %v234_v24 = vpop.f32.mrb[3].mxu1  ;;  %v369_v25 = vpack.c.bf16 %v359_v11, %v359_v11  ;;  %v1645_v15 = vld [vmem:[%s2044_s2 + $0x248] sm:$0xff]   ;;  %v1649_v20 = vld [vmem:[%s2044_s2 + $0x258] sm:$0xff]  }
  0xe3   :  { %v370_v21 = vpack.c.bf16 %v360_v14, %v360_v14  ;;  %v372_v26 = vpack.c.bf16 %v362_v19, %v362_v19  ;;  %v1644_v14 = vld [vmem:[%s2044_s2 + $0x200] sm:$0xff]   ;;  %v1647_v18 = vld [vmem:[%s2044_s2 + $0x250] sm:$0xff]   ;;  %v1653_v24 = vld [vmem:[%s2044_s2 + $0x268] sm:$0xff]  }
  0xe4   :  { %v1648_v19 = vld [vmem:[%s2044_s2 + $0x210] sm:$0xff]  }
  0xe5   :  { %1058 = vmatprep.mubr.bf16.mxu1 %v370_v21  ;;  %1098 = vmatprep.mubr.bf16.mxu0 %v372_v26  ;;  %v1650_v21 = vld [vmem:[%s2044_s2 + $0x218] sm:$0xff]   ;;  %v1655_v26 = vld [vmem:[%s2044_s2 + $0x270] sm:$0xff]  }
  0xe6   :  { %1059 = vmatmul.mubr.bf16.vlgmr.msra.gmra.mrb[8].mxu1 %v369_v25  ;;  %1099 = vmatmul.mubr.bf16.vlgmr.msra.gmra.mrb[12].mxu0 %v371_v22  ;;  %v1651_v22 = vld [vmem:[%s2044_s2 + $0x260] sm:$0xff]   ;;  %v1654_v25 = vld [vmem:[%s2044_s2 + $0x228] sm:$0xff]  }
  0xe7   :  { %1468 = vmatpush3.bf16.msra.mxu1 %v1612_v23  ;;  %v1889_v31 = vpop.f32.mrb[4].mxu0  ;;  %1490 = vmatpush3.bf16.msra.mxu0 %v1614_v27  ;;  %v1897_v35 = vpop.f32.mrb[4].mxu1  ;;  %v1652_v23 = vld [vmem:[%s2044_s2 + $0x220] sm:$0xff]   ;;  %v1656_v27 = vld [vmem:[%s2044_s2 + $0x230] sm:$0xff]  }
  0xe8   :  { %1469 = vmatprep.subr.bf16.mxu1 %v1615_v28  ;;  %v272_v34 = vpop.f32.mrb[5].mxu0  ;;  %1491 = vmatprep.subr.bf16.mxu0 %v1617_v29  ;;  %v313_v39 = vpop.f32.mrb[5].mxu1  ;;  %v363_v6 = vmax.f32 %v1889_v31, 0.0  ;;  %v365_v7 = vmax.f32 %v1897_v35, 0.0  ;;  %v1657_v28 = vld [vmem:[%s2044_s2 + $0x278] sm:$0xff]   ;;  %v1661_v35 = vld [vmem:[%s2045_s4 + $0x10] sm:$0xff]  }
  0xe9   :  { %v364_v37 = vmax.f32 %v272_v34, 0.0  ;;  %v274_v38 = vpop.f32.mrb[6].mxu0  ;;  %v366_v41 = vmax.f32 %v313_v39, 0.0  ;;  %v315_v42 = vpop.f32.mrb[6].mxu1  ;;  %v1658_v29 = vld [vmem:[%s2044_s2 + $0x238] sm:$0xff]   ;;  %v1660_v34 = vld [vmem:[%s2045_s4 + $0x8] sm:$0xff]  }
  0xea   :  { %v275_v40 = vpop.f32.mrb[7].mxu0  ;;  %v316_v45 = vpop.f32.mrb[7].mxu1  ;;  %v373_v12 = vpack.c.bf16 %v363_v6, %v363_v6  ;;  %v375_v13 = vpack.c.bf16 %v365_v7, %v365_v7  ;;  %v1337_v39 = vld [vmem:[%s2046_s3] ss:$0 sm:$0xff]  ;;  %v1236_v7 = vstv %s2047_s5 }
  0xeb   :  { %1470 = vmatpush3.bf16.msra.mxu1 %v1616_v30  ;;  %v374_v44 = vpack.c.bf16 %v364_v37, %v364_v37  ;;  %1492 = vmatpush3.bf16.msra.mxu0 %v1618_v32  ;;  %v376_v48 = vpack.c.bf16 %v366_v41, %v366_v41  ;;  %v1665_v32 = vmov 0.0  }
  0xec   :  { %1471 = vmatprep.subr.bf16.mxu1 %v1619_v33  ;;  %1493 = vmatprep.subr.bf16.mxu0 %v1621_v36  ;;  %v1659_v33 = vld [vmem:[%s2045_s4] sm:$0xff]   ;;  %v1662_v36 = vld [vmem:[%s2045_s4 + $0x18] ss:$0 sps:$4 sm:$0x11]  }
  0xed   :  { %1138 = vmatprep.mubr.bf16.mxu1 %v374_v44  ;;  %1178 = vmatprep.mubr.bf16.mxu0 %v376_v48  ;;  %v1264_v37 = vsel %vm1262_vm3, %v1662_v36, 0 }
  0xef   :  { %1472 = vmatpush3.bf16.msra.mxu1 %v1620_v43  ;;  %v1917_v51 = vpop.f32.mrb[8].mxu0  ;;  %1494 = vmatpush3.bf16.msra.mxu0 %v1622_v46 }
  0xf0   :  { %1473 = vmatprep.subr.bf16.mxu1 %v1623_v47  ;;  %v354_v54 = vpop.f32.mrb[9].mxu0  ;;  %1495 = vmatprep.subr.bf16.mxu0 %v1625_v49  ;;  %v367_v30 = vmax.f32 %v1917_v51, 0.0 }
  0xf1   :  { %v356_v56 = vpop.f32.mrb[10].mxu0  ;;  %v368_v11 = vmax.f32 %v354_v54, 0.0 }
  0xf2   :  { %v357_v57 = vpop.f32.mrb[11].mxu0  ;;  %v377_v31 = vpack.c.bf16 %v367_v30, %v367_v30 }
  0xf3   :  { %1474 = vmatpush3.bf16.msra.mxu1 %v1624_v50  ;;  %1496 = vmatpush3.bf16.msra.mxu0 %v1626_v52  ;;  %v378_v16 = vpack.c.bf16 %v368_v11, %v368_v11 }
  0xf4   :  { %1475 = vmatprep.subr.bf16.mxu1 %v1627_v53  ;;  %1497 = vmatprep.subr.bf16.mxu0 %v1629_v55 }
  0xf7   :  { %1476 = vmatpush3.bf16.msra.mxu1 %v1628_v58  ;;  %1498 = vmatpush3.bf16.msra.mxu0 %v1630_v59 }
  0xf8   :  { %1477 = vmatprep.subr.bf16.mxu1 %v1631_v60  ;;  %1499 = vmatprep.subr.bf16.mxu0 %v1633_v61 }
  0xfb   :  { %1478 = vmatpush3.bf16.msra.mxu1 %v1632_v62  ;;  %1500 = vmatpush3.bf16.msra.mxu0 %v1634_v63 }
  0xfc   :  { %1479 = vmatprep.subr.bf16.mxu1 %v1635_v0  ;;  %1501 = vmatprep.subr.bf16.mxu0 %v1637_v1 }
  0xff   :  { %1480 = vmatpush3.bf16.msra.mxu1 %v1636_v2  ;;  %1502 = vmatpush3.bf16.msra.mxu0 %v1638_v3 }
 0x100   :  { %1481 = vmatprep.subr.bf16.mxu1 %v1639_v4  ;;  %1503 = vmatprep.subr.bf16.mxu0 %v1641_v5 }
 0x103   :  { %1482 = vmatpush3.bf16.msra.mxu1 %v1640_v8  ;;  %1504 = vmatpush3.bf16.msra.mxu0 %v1642_v9 }
 0x104   :  { %1511 = vmatprep.subr.bf16.mxu1 %v1643_v10  ;;  %1538 = vmatprep.subr.bf16.mxu0 %v1665_v32 }
 0x106   :  { %1139 = vmatmul.mubr.bf16.vlgmr.msra.gmra.mrb[12].mxu1 %v373_v12  ;;  %1179 = vmatmul.mubr.bf16.vlgmr.msra.gmra.mrb[16].mxu0 %v375_v13 }
 0x107   :  { %1512 = vmatpush3.bf16.msra.mxu1 %v1644_v14  ;;  %1218 = vmatprep.mubr.bf16.mxu1 %v378_v16 }
 0x108   :  { %1513 = vmatprep.subr.bf16.mxu1 %v1645_v15  ;;  %1539 = vmatpush3.bf16.msra.mxu0 %v1659_v33 }
 0x109   :  { %1540 = vmatprep.subr.bf16.mxu0 %v1665_v32  ;;  %1546 = vmatprep.mubr.msk.bf16.mxu0 %vm1666_vm4, %v1665_v32 }
 0x10b   :  { %1514 = vmatpush3.bf16.msra.mxu1 %v1646_v17 }
 0x10c   :  { %1515 = vmatprep.subr.bf16.mxu1 %v1647_v18  ;;  %1541 = vmatpush3.bf16.msra.mxu0 %v1660_v34 }
 0x10d   :  { %1542 = vmatprep.subr.bf16.mxu0 %v1665_v32 }
 0x10f   :  { %1516 = vmatpush3.bf16.msra.mxu1 %v1648_v19 }
 0x110   :  { %1517 = vmatprep.subr.bf16.mxu1 %v1649_v20  ;;  %1543 = vmatpush3.bf16.msra.mxu0 %v1661_v35 }
 0x111   :  { %1544 = vmatprep.subr.bf16.mxu0 %v1665_v32 }
 0x113   :  { %1518 = vmatpush3.bf16.msra.mxu1 %v1650_v21 }
 0x114   :  { %1519 = vmatprep.subr.bf16.mxu1 %v1651_v22  ;;  %1545 = vmatpush3.bf16.msra.mxu0 %v1264_v37 }
 0x117   :  { %1520 = vmatpush3.bf16.msra.mxu1 %v1652_v23 }
 0x118   :  { %1521 = vmatprep.subr.bf16.mxu1 %v1653_v24 }
 0x11b   :  { %1522 = vmatpush3.bf16.msra.mxu1 %v1654_v25 }
 0x11c   :  { %1523 = vmatprep.subr.bf16.mxu1 %v1655_v26 }
 0x11f   :  { %1524 = vmatpush3.bf16.msra.mxu1 %v1656_v27 }
 0x120   :  { %1525 = vmatprep.subr.bf16.mxu1 %v1657_v28 }
 0x123   :  { %1526 = vmatpush3.bf16.msra.mxu1 %v1658_v29 }
 0x126   :  { %1219 = vmatmul.mubr.bf16.vlgmr.msra.gmra.mrb[16].mxu1 %v377_v31 }
 0x1b9   :  { %v1439_v38 = vpop.f32.mrb[8].mxu1  ;;  %v1461_v41 = vpop.f32.mrb[12].mxu0 }
 0x1ba   :  { %v1440_v40 = vpop.f32.mrb[9].mxu1  ;;  %v1462_v44 = vpop.f32.mrb[13].mxu0 }
 0x1bb   :  { %v1441_v42 = vadd.f32 %v1440_v40, %v1439_v38  ;;  %v1442_v43 = vpop.f32.mrb[10].mxu1  ;;  %v1463_v46 = vadd.f32 %v1462_v44, %v1461_v41  ;;  %v1464_v47 = vpop.f32.mrb[14].mxu0 }
 0x1bc   :  { %v1443_v45 = vpop.f32.mrb[11].mxu1  ;;  %v1465_v49 = vpop.f32.mrb[15].mxu0 }
 0x1bd   :  { %v1061_v48 = vadd.f32 %v1441_v42, %v1337_v39 }
 0x1bf   :  { %v1101_v50 = vadd.f32 %v1463_v46, %v1061_v48 }
 0x1d9   :  { %v1483_v51 = vpop.f32.mrb[12].mxu1  ;;  %v1505_v53 = vpop.f32.mrb[16].mxu0 }
 0x1da   :  { %v1484_v52 = vpop.f32.mrb[13].mxu1  ;;  %v1506_v56 = vpop.f32.mrb[17].mxu0 }
 0x1db   :  { %v1485_v54 = vadd.f32 %v1484_v52, %v1483_v51  ;;  %v1486_v55 = vpop.f32.mrb[14].mxu1  ;;  %v1507_v58 = vadd.f32 %v1506_v56, %v1505_v53  ;;  %v1508_v59 = vpop.f32.mrb[18].mxu0 }
 0x1dc   :  { %v1487_v57 = vpop.f32.mrb[15].mxu1  ;;  %v1509_v61 = vpop.f32.mrb[19].mxu0 }
 0x1dd   :  { %v1141_v60 = vadd.f32 %v1485_v54, %v1101_v50 }
 0x1df   :  { %v1181_v62 = vadd.f32 %v1507_v58, %v1141_v60 }
 0x1f9   :  { %v1527_v63 = vpop.f32.mrb[16].mxu1 }
 0x1fa   :  { %v1528_v0 = vpop.f32.mrb[17].mxu1 }
 0x1fb   :  { %v1529_v1 = vadd.f32 %v1528_v0, %v1527_v63  ;;  %v1530_v2 = vpop.f32.mrb[18].mxu1 }
 0x1fc   :  { %v1531_v3 = vpop.f32.mrb[19].mxu1 }
 0x1fd   :  { %v1221_v4 = vadd.f32 %v1529_v1, %v1181_v62 }
 0x1ff   :  { %v1226_v5 = vmax.f32 %v1221_v4, 0.0 }
 0x201   :  { %v1227_v6 = vpack.c.bf16 %v1226_v5, %v1226_v5 }
 0x203   :  { %1547 = vmatmul.mubr.msk.bf16.vlgmr.msra.gmra.mrb[20].mxu0 %vm1258_vm5, %v1227_v6 }
 0x2d6   :  { %v1300_v8 = vpop.f32.mrb[20].mxu0 }
 0x2d7   :  { %v1301_v9 = vadd.f32 %v1300_v8, %v1236_v7  ;;  %v1548_v10 = vpop.f32.mrb[21].mxu0 }
 0x2d8   :  { %v1303_v11 = vpop.f32.mrb[22].mxu0 }
 0x2d9   :  { %1307 = vst.msk [vmem:[%s2048_s6] sm:$0xff] %vm1306_vm6, %v1301_v9  ;;  %v1549_v12 = vpop.f32.mrb[23].mxu0 }

</bundles_post_ra>
